<compile_context>
chip_gen: v7x
topology: tpu7x:2x2x1
jax: 0.10.0
libtpu: 0.0.40
codegen_flags: <defaults>
</compile_context>

<pallas_src>
import functools

import jax
import jax.numpy as jnp
import numpy as np
from jax.experimental import pallas as pl
from jax.experimental.pallas import tpu as pltpu


def _bilstm_recurrence_kernel(pf_ref,   # (Tc, Bp, 4H) pre-projected inputs, forward chunk
                              pb_ref,   # (Tc, Bp, 4H) pre-projected inputs, backward chunk
                              whf_ref,  # (H, 4H) recurrent weights, forward
                              whb_ref,  # (H, 4H) recurrent weights, backward
                              out_ref,  # (Bp, H)
                              hf_ref, cf_ref, hb_ref, cb_ref,  # VMEM scratch (Bp, H) f32
                              *, hidden, chunk):
    g = pl.program_id(0)

    @pl.when(g == 0)
    def _init():
        hf_ref[...] = jnp.zeros_like(hf_ref)
        cf_ref[...] = jnp.zeros_like(cf_ref)
        hb_ref[...] = jnp.zeros_like(hb_ref)
        cb_ref[...] = jnp.zeros_like(cb_ref)

    H = hidden
    # Hoist weight / state loads out of the unrolled time loop.
    wf = whf_ref[...]
    wb = whb_ref[...]
    hf = hf_ref[...]
    cf = cf_ref[...]
    hb = hb_ref[...]
    cb = cb_ref[...]

    def cell(z, c):
        # Gate order matches torch nn.LSTM packing: (i, f, g, o).
        i_g = jax.nn.sigmoid(z[:, 0 * H:1 * H])
        f_g = jax.nn.sigmoid(z[:, 1 * H:2 * H])
        g_g = jnp.tanh(z[:, 2 * H:3 * H])
        o_g = jax.nn.sigmoid(z[:, 3 * H:4 * H])
        c_new = f_g * c + i_g * g_g
        h_new = o_g * jnp.tanh(c_new)
        return h_new, c_new

    # Fully unrolled over the time chunk; forward & backward steps interleaved so the
    # two independent recurrences overlap (MXU of one under EUP of the other).
    for i in range(chunk):
        zf = pf_ref[i] + jnp.dot(hf, wf, preferred_element_type=jnp.float32)
        hf, cf = cell(zf, cf)
        zb = pb_ref[chunk - 1 - i] + jnp.dot(hb, wb, preferred_element_type=jnp.float32)
        hb, cb = cell(zb, cb)

    hf_ref[...] = hf
    cf_ref[...] = cf
    hb_ref[...] = hb
    cb_ref[...] = cb

    @pl.when(g == pl.num_programs(0) - 1)
    def _finalize():
        # torch: hn has shape (2, B, H); squeeze is a no-op for B > 1; sum over dim 0.
        out_ref[...] = hf + hb


@functools.partial(jax.jit, static_argnames=("seq_chunk",))
def bilstm_forward(x_btd, wx_f, wh_f, b_f, wx_b, wh_b, b_b, *, seq_chunk=None):
    """Bidirectional LSTM final-hidden-state sum.

    Args:
      x_btd: (B, T, Din) batch-first input (like the torch module).
      wx_f / wx_b: (Din, 4H) merged input-gate weights (gate order i,f,g,o), per direction.
      wh_f / wh_b: (H, 4H) merged recurrent-gate weights, per direction.
      b_f / b_b:   (4H,) combined biases (b_ih + b_hh), per direction.
      seq_chunk:   timesteps per pipelined grid step (must divide T).
    Returns: (B, H) float32.
    """
    B, T, Din = x_btd.shape
    H = wh_f.shape[0]

    if seq_chunk is None:
        seq_chunk = T
        for cand in (32, 16, 8, 4, 2, 1):
            if T % cand == 0:
                seq_chunk = cand
                break
    if T % seq_chunk != 0:
        raise ValueError(f"seq_chunk={seq_chunk} must divide T={T}")
    Tc = seq_chunk
    nblk = T // Tc

    # Pad batch (sublane dim) to a multiple of 8 so per-step vector work is dense.
    Bp = ((B + 7) // 8) * 8

    # ---- Hoisted input projection over the whole sequence, both directions merged ----
    # One big MXU-friendly matmul with M = B*T rows; biases folded in. Done on the
    # batch-first layout directly (no HBM transpose of x).
    wx = jnp.concatenate([wx_f, wx_b], axis=1)   # (Din, 8H)
    bias = jnp.concatenate([b_f, b_b], axis=0)   # (8H,)
    proj = jnp.dot(x_btd.reshape(B * T, Din), wx,
                   preferred_element_type=jnp.float32) + bias          # (B*T, 8H)
    proj = proj.reshape(B, T, 8 * H)
    if Bp != B:
        proj = jnp.pad(proj, ((0, Bp - B), (0, 0), (0, 0)))
    proj = jnp.transpose(proj, (1, 0, 2))                              # (T, Bp, 8H)
    pf = proj[:, :, :4 * H]                                            # forward gates
    pb = proj[:, :, 4 * H:]                                            # backward gates

    kernel = functools.partial(_bilstm_recurrence_kernel, hidden=H, chunk=Tc)

    out_padded = pl.pallas_call(
        kernel,
        out_shape=jax.ShapeDtypeStruct((Bp, H), jnp.float32),
        grid_spec=pltpu.PrefetchScalarGridSpec(
            num_scalar_prefetch=0,
            grid=(nblk,),
            in_specs=[
                # forward direction reads time chunks front-to-back
                pl.BlockSpec((Tc, Bp, 4 * H), lambda g: (g, 0, 0)),
                # backward direction reads time chunks back-to-front
                pl.BlockSpec((Tc, Bp, 4 * H), lambda g: (nblk - 1 - g, 0, 0)),
                # recurrent weights stay resident (constant block index)
                pl.BlockSpec((H, 4 * H), lambda g: (0, 0)),
                pl.BlockSpec((H, 4 * H), lambda g: (0, 0)),
            ],
            out_specs=pl.BlockSpec((Bp, H), lambda g: (0, 0)),
            scratch_shapes=[pltpu.VMEM((Bp, H), jnp.float32)] * 4,
        ),
        compiler_params=pltpu.CompilerParams(
            dimension_semantics=("arbitrary",),   # sequential recurrence over time
        ),
    )(pf, pb, wh_f, wh_b)

    return out_padded[:B]


def _lstm_dir_ref(x_tbd, wx, wh, b):
    """Pure-JAX reference, one direction (x already in processing order), merged gates."""
    T, B, _ = x_tbd.shape
    H = wh.shape[0]
    h = jnp.zeros((B, H), jnp.float32)
    c = jnp.zeros((B, H), jnp.float32)
    for t in range(T):
        z = x_tbd[t] @ wx + h @ wh + b
        i_g = jax.nn.sigmoid(z[:, :H])
        f_g = jax.nn.sigmoid(z[:, H:2 * H])
        g_g = jnp.tanh(z[:, 2 * H:3 * H])
        o_g = jax.nn.sigmoid(z[:, 3 * H:4 * H])
        c = f_g * c + i_g * g_g
        h = o_g * jnp.tanh(c)
    return h


if __name__ == "__main__":
    # Small shapes consistent with the module: (batch, seq, input_dim), hidden_dim.
    B, T, DIN, H = 2, 8, 16, 32

    key = jax.random.PRNGKey(0)
    ks = jax.random.split(key, 9)
    bound = 1.0 / np.sqrt(H)  # match torch nn.LSTM init scale (deterministic, synthetic)

    def u(k, shape):
        return jax.random.uniform(k, shape, jnp.float32, minval=-bound, maxval=bound)

    x = jax.random.normal(ks[0], (B, T, DIN), jnp.float32)

    # torch nn.LSTM parameter layout, gate order (i, f, g, o) stacked along dim 0.
    w_ih_f = u(ks[1], (4 * H, DIN))
    w_hh_f = u(ks[2], (4 * H, H))
    b_f = u(ks[3], (4 * H,)) + u(ks[4], (4 * H,))   # b_ih + b_hh, pre-combined
    w_ih_b = u(ks[5], (4 * H, DIN))
    w_hh_b = u(ks[6], (4 * H, H))
    b_b = u(ks[7], (4 * H,)) + u(ks[8], (4 * H,))

    # Merged-gate packing consumed by the kernel: (Din, 4H) / (H, 4H).
    wx_f, wh_f = w_ih_f.T, w_hh_f.T
    wx_b, wh_b = w_ih_b.T, w_hh_b.T

    out = bilstm_forward(x, wx_f, wh_f, b_f, wx_b, wh_b, b_b, seq_chunk=4)
    out = jax.block_until_ready(out)

    # Pure-JAX reference check (mirrors torch LSTM math).
    x_tbd = jnp.transpose(x, (1, 0, 2))
    ref = (_lstm_dir_ref(x_tbd, wx_f, wh_f, b_f)
           + _lstm_dir_ref(x_tbd[::-1], wx_b, wh_b, b_b))
    np.testing.assert_allclose(np.asarray(out), np.asarray(ref), rtol=1e-5, atol=1e-5)

    assert out.shape == (B, H)
    print("KERNEL_OK")
</pallas_src>

<mosaic_0001>
module attributes {stable_mosaic.version = 11 : i64} {
  func.func @_bilstm_recurrence_kernel(%arg0: i32, %arg1: memref<4x8x128xf32, #tpu.memory_space<vmem>>, %arg2: memref<4x8x128xf32, #tpu.memory_space<vmem>>, %arg3: memref<32x128xf32, #tpu.memory_space<vmem>>, %arg4: memref<32x128xf32, #tpu.memory_space<vmem>>, %arg5: memref<8x32xf32, #tpu.memory_space<vmem>>, %arg6: memref<8x32xf32, #tpu.memory_space<vmem>>, %arg7: memref<8x32xf32, #tpu.memory_space<vmem>>, %arg8: memref<8x32xf32, #tpu.memory_space<vmem>>, %arg9: memref<8x32xf32, #tpu.memory_space<vmem>>) attributes {dimension_semantics = [#tpu.dimension_semantics<arbitrary>], iteration_bounds = array<i64: 2>, scalar_prefetch = 0 : i64, scratch_operands = 4 : i64, tpu.core_type = #tpu.core_type<tc>, window_params = [{transform_indices = @transform_0, window_bounds = array<i64: 4, 8, 128>}, {transform_indices = @transform_1, window_bounds = array<i64: 4, 8, 128>}, {pipeline_mode = #tpu.pipeline_mode<synchronous>, transform_indices = @transform_2, window_bounds = array<i64: 32, 128>}, {pipeline_mode = #tpu.pipeline_mode<synchronous>, transform_indices = @transform_3, window_bounds = array<i64: 32, 128>}, {pipeline_mode = #tpu.pipeline_mode<synchronous>, transform_indices = @transform_4, window_bounds = array<i64: 8, 32>}]} {
    %c0_i32 = arith.constant 0 : i32
    %0 = arith.cmpi eq, %arg0, %c0_i32 : i32
    %1 = arith.extui %0 : i1 to i32
    %c0_i32_0 = arith.constant 0 : i32
    %2 = arith.cmpi ne, %1, %c0_i32_0 : i32
    scf.if %2 {
      %cst_73 = arith.constant 0.000000e+00 : f32
      %248 = vector.broadcast %cst_73 : f32 to vector<8x32xf32>
      %c0_74 = arith.constant 0 : index
      %c0_75 = arith.constant 0 : index
      %249 = vector.load %arg6[%c0_74, %c0_75] : memref<8x32xf32, #tpu.memory_space<vmem>>, vector<8x32xf32>
      tpu.vector_store %arg6[%c0_74, %c0_75], %248 {strides = array<i32>} : memref<8x32xf32, #tpu.memory_space<vmem>>, vector<8x32xf32>,
      %cst_76 = arith.constant 0.000000e+00 : f32
      %250 = vector.broadcast %cst_76 : f32 to vector<8x32xf32>
      %c0_77 = arith.constant 0 : index
      %c0_78 = arith.constant 0 : index
      %251 = vector.load %arg7[%c0_77, %c0_78] : memref<8x32xf32, #tpu.memory_space<vmem>>, vector<8x32xf32>
      tpu.vector_store %arg7[%c0_77, %c0_78], %250 {strides = array<i32>} : memref<8x32xf32, #tpu.memory_space<vmem>>, vector<8x32xf32>,
      %cst_79 = arith.constant 0.000000e+00 : f32
      %252 = vector.broadcast %cst_79 : f32 to vector<8x32xf32>
      %c0_80 = arith.constant 0 : index
      %c0_81 = arith.constant 0 : index
      %253 = vector.load %arg8[%c0_80, %c0_81] : memref<8x32xf32, #tpu.memory_space<vmem>>, vector<8x32xf32>
      tpu.vector_store %arg8[%c0_80, %c0_81], %252 {strides = array<i32>} : memref<8x32xf32, #tpu.memory_space<vmem>>, vector<8x32xf32>,
      %cst_82 = arith.constant 0.000000e+00 : f32
      %254 = vector.broadcast %cst_82 : f32 to vector<8x32xf32>
      %c0_83 = arith.constant 0 : index
      %c0_84 = arith.constant 0 : index
      %255 = vector.load %arg9[%c0_83, %c0_84] : memref<8x32xf32, #tpu.memory_space<vmem>>, vector<8x32xf32>
      tpu.vector_store %arg9[%c0_83, %c0_84], %254 {strides = array<i32>} : memref<8x32xf32, #tpu.memory_space<vmem>>, vector<8x32xf32>,
    } else {
    }
    %c0 = arith.constant 0 : index
    %c0_1 = arith.constant 0 : index
    %3 = vector.load %arg3[%c0, %c0_1] : memref<32x128xf32, #tpu.memory_space<vmem>>, vector<32x128xf32>
    %c0_2 = arith.constant 0 : index
    %c0_3 = arith.constant 0 : index
    %4 = vector.load %arg4[%c0_2, %c0_3] : memref<32x128xf32, #tpu.memory_space<vmem>>, vector<32x128xf32>
    %c0_4 = arith.constant 0 : index
    %c0_5 = arith.constant 0 : index
    %5 = vector.load %arg6[%c0_4, %c0_5] : memref<8x32xf32, #tpu.memory_space<vmem>>, vector<8x32xf32>
    %c0_6 = arith.constant 0 : index
    %c0_7 = arith.constant 0 : index
    %6 = vector.load %arg7[%c0_6, %c0_7] : memref<8x32xf32, #tpu.memory_space<vmem>>, vector<8x32xf32>
    %c0_8 = arith.constant 0 : index
    %c0_9 = arith.constant 0 : index
    %7 = vector.load %arg8[%c0_8, %c0_9] : memref<8x32xf32, #tpu.memory_space<vmem>>, vector<8x32xf32>
    %c0_10 = arith.constant 0 : index
    %c0_11 = arith.constant 0 : index
    %8 = vector.load %arg9[%c0_10, %c0_11] : memref<8x32xf32, #tpu.memory_space<vmem>>, vector<8x32xf32>
    %c0_12 = arith.constant 0 : index
    %c0_13 = arith.constant 0 : index
    %c0_14 = arith.constant 0 : index
    %9 = vector.load %arg1[%c0_12, %c0_13, %c0_14] : memref<4x8x128xf32, #tpu.memory_space<vmem>>, vector<1x8x128xf32>
    %10 = vector.shape_cast %9 : vector<1x8x128xf32> to vector<8x128xf32>
    %cst = arith.constant dense<0.000000e+00> : vector<8x128xf32>
    %11 = tpu.matmul %5, %3, %cst {dimension_numbers = #tpu.dot_dimension_numbers<[1], [0], [0], [1], [0, 0, 1, 1], [], []>} : vector<8x32xf32>, vector<32x128xf32>, vector<8x128xf32> -> vector<8x128xf32>
    %12 = arith.addf %10, %11 : vector<8x128xf32>
    %13 = vector.extract_strided_slice %12 {offsets = [0, 0], sizes = [8, 32], strides = [1, 1]} : vector<8x128xf32> to vector<8x32xf32>
    %14 = arith.negf %13 : vector<8x32xf32>
    %15 = math.exp %14 : vector<8x32xf32>
    %cst_15 = arith.constant 1.000000e+00 : f32
    %16 = vector.broadcast %cst_15 : f32 to vector<8x32xf32>
    %17 = arith.addf %16, %15 : vector<8x32xf32>
    %18 = arith.divf %16, %17 : vector<8x32xf32>
    %19 = vector.extract_strided_slice %12 {offsets = [0, 32], sizes = [8, 32], strides = [1, 1]} : vector<8x128xf32> to vector<8x32xf32>
    %20 = arith.negf %19 : vector<8x32xf32>
    %21 = math.exp %20 : vector<8x32xf32>
    %cst_16 = arith.constant 1.000000e+00 : f32
    %22 = vector.broadcast %cst_16 : f32 to vector<8x32xf32>
    %23 = arith.addf %22, %21 : vector<8x32xf32>
    %24 = arith.divf %22, %23 : vector<8x32xf32>
    %25 = vector.extract_strided_slice %12 {offsets = [0, 64], sizes = [8, 32], strides = [1, 1]} : vector<8x128xf32> to vector<8x32xf32>
    %26 = math.tanh %25 : vector<8x32xf32>
    %27 = vector.extract_strided_slice %12 {offsets = [0, 96], sizes = [8, 32], strides = [1, 1]} : vector<8x128xf32> to vector<8x32xf32>
    %28 = arith.negf %27 : vector<8x32xf32>
    %29 = math.exp %28 : vector<8x32xf32>
    %cst_17 = arith.constant 1.000000e+00 : f32
    %30 = vector.broadcast %cst_17 : f32 to vector<8x32xf32>
    %31 = arith.addf %30, %29 : vector<8x32xf32>
    %32 = arith.divf %30, %31 : vector<8x32xf32>
    %33 = arith.mulf %24, %6 : vector<8x32xf32>
    %34 = arith.mulf %18, %26 : vector<8x32xf32>
    %35 = arith.addf %33, %34 : vector<8x32xf32>
    %36 = math.tanh %35 : vector<8x32xf32>
    %37 = arith.mulf %32, %36 : vector<8x32xf32>
    %c3 = arith.constant 3 : index
    %c0_18 = arith.constant 0 : index
    %c0_19 = arith.constant 0 : index
    %38 = vector.load %arg2[%c3, %c0_18, %c0_19] : memref<4x8x128xf32, #tpu.memory_space<vmem>>, vector<1x8x128xf32>
    %39 = vector.shape_cast %38 : vector<1x8x128xf32> to vector<8x128xf32>
    %cst_20 = arith.constant dense<0.000000e+00> : vector<8x128xf32>
    %40 = tpu.matmul %7, %4, %cst_20 {dimension_numbers = #tpu.dot_dimension_numbers<[1], [0], [0], [1], [0, 0, 1, 1], [], []>} : vector<8x32xf32>, vector<32x128xf32>, vector<8x128xf32> -> vector<8x128xf32>
    %41 = arith.addf %39, %40 : vector<8x128xf32>
    %42 = vector.extract_strided_slice %41 {offsets = [0, 0], sizes = [8, 32], strides = [1, 1]} : vector<8x128xf32> to vector<8x32xf32>
    %43 = arith.negf %42 : vector<8x32xf32>
    %44 = math.exp %43 : vector<8x32xf32>
    %cst_21 = arith.constant 1.000000e+00 : f32
    %45 = vector.broadcast %cst_21 : f32 to vector<8x32xf32>
    %46 = arith.addf %45, %44 : vector<8x32xf32>
    %47 = arith.divf %45, %46 : vector<8x32xf32>
    %48 = vector.extract_strided_slice %41 {offsets = [0, 32], sizes = [8, 32], strides = [1, 1]} : vector<8x128xf32> to vector<8x32xf32>
    %49 = arith.negf %48 : vector<8x32xf32>
    %50 = math.exp %49 : vector<8x32xf32>
    %cst_22 = arith.constant 1.000000e+00 : f32
    %51 = vector.broadcast %cst_22 : f32 to vector<8x32xf32>
    %52 = arith.addf %51, %50 : vector<8x32xf32>
    %53 = arith.divf %51, %52 : vector<8x32xf32>
    %54 = vector.extract_strided_slice %41 {offsets = [0, 64], sizes = [8, 32], strides = [1, 1]} : vector<8x128xf32> to vector<8x32xf32>
    %55 = math.tanh %54 : vector<8x32xf32>
    %56 = vector.extract_strided_slice %41 {offsets = [0, 96], sizes = [8, 32], strides = [1, 1]} : vector<8x128xf32> to vector<8x32xf32>
    %57 = arith.negf %56 : vector<8x32xf32>
    %58 = math.exp %57 : vector<8x32xf32>
    %cst_23 = arith.constant 1.000000e+00 : f32
    %59 = vector.broadcast %cst_23 : f32 to vector<8x32xf32>
    %60 = arith.addf %59, %58 : vector<8x32xf32>
    %61 = arith.divf %59, %60 : vector<8x32xf32>
    %62 = arith.mulf %53, %8 : vector<8x32xf32>
    %63 = arith.mulf %47, %55 : vector<8x32xf32>
    %64 = arith.addf %62, %63 : vector<8x32xf32>
    %65 = math.tanh %64 : vector<8x32xf32>
    %66 = arith.mulf %61, %65 : vector<8x32xf32>
    %c1 = arith.constant 1 : index
    %c0_24 = arith.constant 0 : index
    %c0_25 = arith.constant 0 : index
    %67 = vector.load %arg1[%c1, %c0_24, %c0_25] : memref<4x8x128xf32, #tpu.memory_space<vmem>>, vector<1x8x128xf32>
    %68 = vector.shape_cast %67 : vector<1x8x128xf32> to vector<8x128xf32>
    %cst_26 = arith.constant dense<0.000000e+00> : vector<8x128xf32>
    %69 = tpu.matmul %37, %3, %cst_26 {dimension_numbers = #tpu.dot_dimension_numbers<[1], [0], [0], [1], [0, 0, 1, 1], [], []>} : vector<8x32xf32>, vector<32x128xf32>, vector<8x128xf32> -> vector<8x128xf32>
    %70 = arith.addf %68, %69 : vector<8x128xf32>
    %71 = vector.extract_strided_slice %70 {offsets = [0, 0], sizes = [8, 32], strides = [1, 1]} : vector<8x128xf32> to vector<8x32xf32>
    %72 = arith.negf %71 : vector<8x32xf32>
    %73 = math.exp %72 : vector<8x32xf32>
    %cst_27 = arith.constant 1.000000e+00 : f32
    %74 = vector.broadcast %cst_27 : f32 to vector<8x32xf32>
    %75 = arith.addf %74, %73 : vector<8x32xf32>
    %76 = arith.divf %74, %75 : vector<8x32xf32>
    %77 = vector.extract_strided_slice %70 {offsets = [0, 32], sizes = [8, 32], strides = [1, 1]} : vector<8x128xf32> to vector<8x32xf32>
    %78 = arith.negf %77 : vector<8x32xf32>
    %79 = math.exp %78 : vector<8x32xf32>
    %cst_28 = arith.constant 1.000000e+00 : f32
    %80 = vector.broadcast %cst_28 : f32 to vector<8x32xf32>
    %81 = arith.addf %80, %79 : vector<8x32xf32>
    %82 = arith.divf %80, %81 : vector<8x32xf32>
    %83 = vector.extract_strided_slice %70 {offsets = [0, 64], sizes = [8, 32], strides = [1, 1]} : vector<8x128xf32> to vector<8x32xf32>
    %84 = math.tanh %83 : vector<8x32xf32>
    %85 = vector.extract_strided_slice %70 {offsets = [0, 96], sizes = [8, 32], strides = [1, 1]} : vector<8x128xf32> to vector<8x32xf32>
    %86 = arith.negf %85 : vector<8x32xf32>
    %87 = math.exp %86 : vector<8x32xf32>
    %cst_29 = arith.constant 1.000000e+00 : f32
    %88 = vector.broadcast %cst_29 : f32 to vector<8x32xf32>
    %89 = arith.addf %88, %87 : vector<8x32xf32>
    %90 = arith.divf %88, %89 : vector<8x32xf32>
    %91 = arith.mulf %82, %35 : vector<8x32xf32>
    %92 = arith.mulf %76, %84 : vector<8x32xf32>
    %93 = arith.addf %91, %92 : vector<8x32xf32>
    %94 = math.tanh %93 : vector<8x32xf32>
    %95 = arith.mulf %90, %94 : vector<8x32xf32>
    %c2 = arith.constant 2 : index
    %c0_30 = arith.constant 0 : index
    %c0_31 = arith.constant 0 : index
    %96 = vector.load %arg2[%c2, %c0_30, %c0_31] : memref<4x8x128xf32, #tpu.memory_space<vmem>>, vector<1x8x128xf32>
    %97 = vector.shape_cast %96 : vector<1x8x128xf32> to vector<8x128xf32>
    %cst_32 = arith.constant dense<0.000000e+00> : vector<8x128xf32>
    %98 = tpu.matmul %66, %4, %cst_32 {dimension_numbers = #tpu.dot_dimension_numbers<[1], [0], [0], [1], [0, 0, 1, 1], [], []>} : vector<8x32xf32>, vector<32x128xf32>, vector<8x128xf32> -> vector<8x128xf32>
    %99 = arith.addf %97, %98 : vector<8x128xf32>
    %100 = vector.extract_strided_slice %99 {offsets = [0, 0], sizes = [8, 32], strides = [1, 1]} : vector<8x128xf32> to vector<8x32xf32>
    %101 = arith.negf %100 : vector<8x32xf32>
    %102 = math.exp %101 : vector<8x32xf32>
    %cst_33 = arith.constant 1.000000e+00 : f32
    %103 = vector.broadcast %cst_33 : f32 to vector<8x32xf32>
    %104 = arith.addf %103, %102 : vector<8x32xf32>
    %105 = arith.divf %103, %104 : vector<8x32xf32>
    %106 = vector.extract_strided_slice %99 {offsets = [0, 32], sizes = [8, 32], strides = [1, 1]} : vector<8x128xf32> to vector<8x32xf32>
    %107 = arith.negf %106 : vector<8x32xf32>
    %108 = math.exp %107 : vector<8x32xf32>
    %cst_34 = arith.constant 1.000000e+00 : f32
    %109 = vector.broadcast %cst_34 : f32 to vector<8x32xf32>
    %110 = arith.addf %109, %108 : vector<8x32xf32>
    %111 = arith.divf %109, %110 : vector<8x32xf32>
    %112 = vector.extract_strided_slice %99 {offsets = [0, 64], sizes = [8, 32], strides = [1, 1]} : vector<8x128xf32> to vector<8x32xf32>
    %113 = math.tanh %112 : vector<8x32xf32>
    %114 = vector.extract_strided_slice %99 {offsets = [0, 96], sizes = [8, 32], strides = [1, 1]} : vector<8x128xf32> to vector<8x32xf32>
    %115 = arith.negf %114 : vector<8x32xf32>
    %116 = math.exp %115 : vector<8x32xf32>
    %cst_35 = arith.constant 1.000000e+00 : f32
    %117 = vector.broadcast %cst_35 : f32 to vector<8x32xf32>
    %118 = arith.addf %117, %116 : vector<8x32xf32>
    %119 = arith.divf %117, %118 : vector<8x32xf32>
    %120 = arith.mulf %111, %64 : vector<8x32xf32>
    %121 = arith.mulf %105, %113 : vector<8x32xf32>
    %122 = arith.addf %120, %121 : vector<8x32xf32>
    %123 = math.tanh %122 : vector<8x32xf32>
    %124 = arith.mulf %119, %123 : vector<8x32xf32>
    %c2_36 = arith.constant 2 : index
    %c0_37 = arith.constant 0 : index
    %c0_38 = arith.constant 0 : index
    %125 = vector.load %arg1[%c2_36, %c0_37, %c0_38] : memref<4x8x128xf32, #tpu.memory_space<vmem>>, vector<1x8x128xf32>
    %126 = vector.shape_cast %125 : vector<1x8x128xf32> to vector<8x128xf32>
    %cst_39 = arith.constant dense<0.000000e+00> : vector<8x128xf32>
    %127 = tpu.matmul %95, %3, %cst_39 {dimension_numbers = #tpu.dot_dimension_numbers<[1], [0], [0], [1], [0, 0, 1, 1], [], []>} : vector<8x32xf32>, vector<32x128xf32>, vector<8x128xf32> -> vector<8x128xf32>
    %128 = arith.addf %126, %127 : vector<8x128xf32>
    %129 = vector.extract_strided_slice %128 {offsets = [0, 0], sizes = [8, 32], strides = [1, 1]} : vector<8x128xf32> to vector<8x32xf32>
    %130 = arith.negf %129 : vector<8x32xf32>
    %131 = math.exp %130 : vector<8x32xf32>
    %cst_40 = arith.constant 1.000000e+00 : f32
    %132 = vector.broadcast %cst_40 : f32 to vector<8x32xf32>
    %133 = arith.addf %132, %131 : vector<8x32xf32>
    %134 = arith.divf %132, %133 : vector<8x32xf32>
    %135 = vector.extract_strided_slice %128 {offsets = [0, 32], sizes = [8, 32], strides = [1, 1]} : vector<8x128xf32> to vector<8x32xf32>
    %136 = arith.negf %135 : vector<8x32xf32>
    %137 = math.exp %136 : vector<8x32xf32>
    %cst_41 = arith.constant 1.000000e+00 : f32
    %138 = vector.broadcast %cst_41 : f32 to vector<8x32xf32>
    %139 = arith.addf %138, %137 : vector<8x32xf32>
    %140 = arith.divf %138, %139 : vector<8x32xf32>
    %141 = vector.extract_strided_slice %128 {offsets = [0, 64], sizes = [8, 32], strides = [1, 1]} : vector<8x128xf32> to vector<8x32xf32>
    %142 = math.tanh %141 : vector<8x32xf32>
    %143 = vector.extract_strided_slice %128 {offsets = [0, 96], sizes = [8, 32], strides = [1, 1]} : vector<8x128xf32> to vector<8x32xf32>
    %144 = arith.negf %143 : vector<8x32xf32>
    %145 = math.exp %144 : vector<8x32xf32>
    %cst_42 = arith.constant 1.000000e+00 : f32
    %146 = vector.broadcast %cst_42 : f32 to vector<8x32xf32>
    %147 = arith.addf %146, %145 : vector<8x32xf32>
    %148 = arith.divf %146, %147 : vector<8x32xf32>
    %149 = arith.mulf %140, %93 : vector<8x32xf32>
    %150 = arith.mulf %134, %142 : vector<8x32xf32>
    %151 = arith.addf %149, %150 : vector<8x32xf32>
    %152 = math.tanh %151 : vector<8x32xf32>
    %153 = arith.mulf %148, %152 : vector<8x32xf32>
    %c1_43 = arith.constant 1 : index
    %c0_44 = arith.constant 0 : index
    %c0_45 = arith.constant 0 : index
    %154 = vector.load %arg2[%c1_43, %c0_44, %c0_45] : memref<4x8x128xf32, #tpu.memory_space<vmem>>, vector<1x8x128xf32>
    %155 = vector.shape_cast %154 : vector<1x8x128xf32> to vector<8x128xf32>
    %cst_46 = arith.constant dense<0.000000e+00> : vector<8x128xf32>
    %156 = tpu.matmul %124, %4, %cst_46 {dimension_numbers = #tpu.dot_dimension_numbers<[1], [0], [0], [1], [0, 0, 1, 1], [], []>} : vector<8x32xf32>, vector<32x128xf32>, vector<8x128xf32> -> vector<8x128xf32>
    %157 = arith.addf %155, %156 : vector<8x128xf32>
    %158 = vector.extract_strided_slice %157 {offsets = [0, 0], sizes = [8, 32], strides = [1, 1]} : vector<8x128xf32> to vector<8x32xf32>
    %159 = arith.negf %158 : vector<8x32xf32>
    %160 = math.exp %159 : vector<8x32xf32>
    %cst_47 = arith.constant 1.000000e+00 : f32
    %161 = vector.broadcast %cst_47 : f32 to vector<8x32xf32>
    %162 = arith.addf %161, %160 : vector<8x32xf32>
    %163 = arith.divf %161, %162 : vector<8x32xf32>
    %164 = vector.extract_strided_slice %157 {offsets = [0, 32], sizes = [8, 32], strides = [1, 1]} : vector<8x128xf32> to vector<8x32xf32>
    %165 = arith.negf %164 : vector<8x32xf32>
    %166 = math.exp %165 : vector<8x32xf32>
    %cst_48 = arith.constant 1.000000e+00 : f32
    %167 = vector.broadcast %cst_48 : f32 to vector<8x32xf32>
    %168 = arith.addf %167, %166 : vector<8x32xf32>
    %169 = arith.divf %167, %168 : vector<8x32xf32>
    %170 = vector.extract_strided_slice %157 {offsets = [0, 64], sizes = [8, 32], strides = [1, 1]} : vector<8x128xf32> to vector<8x32xf32>
    %171 = math.tanh %170 : vector<8x32xf32>
    %172 = vector.extract_strided_slice %157 {offsets = [0, 96], sizes = [8, 32], strides = [1, 1]} : vector<8x128xf32> to vector<8x32xf32>
    %173 = arith.negf %172 : vector<8x32xf32>
    %174 = math.exp %173 : vector<8x32xf32>
    %cst_49 = arith.constant 1.000000e+00 : f32
    %175 = vector.broadcast %cst_49 : f32 to vector<8x32xf32>
    %176 = arith.addf %175, %174 : vector<8x32xf32>
    %177 = arith.divf %175, %176 : vector<8x32xf32>
    %178 = arith.mulf %169, %122 : vector<8x32xf32>
    %179 = arith.mulf %163, %171 : vector<8x32xf32>
    %180 = arith.addf %178, %179 : vector<8x32xf32>
    %181 = math.tanh %180 : vector<8x32xf32>
    %182 = arith.mulf %177, %181 : vector<8x32xf32>
    %c3_50 = arith.constant 3 : index
    %c0_51 = arith.constant 0 : index
    %c0_52 = arith.constant 0 : index
    %183 = vector.load %arg1[%c3_50, %c0_51, %c0_52] : memref<4x8x128xf32, #tpu.memory_space<vmem>>, vector<1x8x128xf32>
    %184 = vector.shape_cast %183 : vector<1x8x128xf32> to vector<8x128xf32>
    %cst_53 = arith.constant dense<0.000000e+00> : vector<8x128xf32>
    %185 = tpu.matmul %153, %3, %cst_53 {dimension_numbers = #tpu.dot_dimension_numbers<[1], [0], [0], [1], [0, 0, 1, 1], [], []>} : vector<8x32xf32>, vector<32x128xf32>, vector<8x128xf32> -> vector<8x128xf32>
    %186 = arith.addf %184, %185 : vector<8x128xf32>
    %187 = vector.extract_strided_slice %186 {offsets = [0, 0], sizes = [8, 32], strides = [1, 1]} : vector<8x128xf32> to vector<8x32xf32>
    %188 = arith.negf %187 : vector<8x32xf32>
    %189 = math.exp %188 : vector<8x32xf32>
    %cst_54 = arith.constant 1.000000e+00 : f32
    %190 = vector.broadcast %cst_54 : f32 to vector<8x32xf32>
    %191 = arith.addf %190, %189 : vector<8x32xf32>
    %192 = arith.divf %190, %191 : vector<8x32xf32>
    %193 = vector.extract_strided_slice %186 {offsets = [0, 32], sizes = [8, 32], strides = [1, 1]} : vector<8x128xf32> to vector<8x32xf32>
    %194 = arith.negf %193 : vector<8x32xf32>
    %195 = math.exp %194 : vector<8x32xf32>
    %cst_55 = arith.constant 1.000000e+00 : f32
    %196 = vector.broadcast %cst_55 : f32 to vector<8x32xf32>
    %197 = arith.addf %196, %195 : vector<8x32xf32>
    %198 = arith.divf %196, %197 : vector<8x32xf32>
    %199 = vector.extract_strided_slice %186 {offsets = [0, 64], sizes = [8, 32], strides = [1, 1]} : vector<8x128xf32> to vector<8x32xf32>
    %200 = math.tanh %199 : vector<8x32xf32>
    %201 = vector.extract_strided_slice %186 {offsets = [0, 96], sizes = [8, 32], strides = [1, 1]} : vector<8x128xf32> to vector<8x32xf32>
    %202 = arith.negf %201 : vector<8x32xf32>
    %203 = math.exp %202 : vector<8x32xf32>
    %cst_56 = arith.constant 1.000000e+00 : f32
    %204 = vector.broadcast %cst_56 : f32 to vector<8x32xf32>
    %205 = arith.addf %204, %203 : vector<8x32xf32>
    %206 = arith.divf %204, %205 : vector<8x32xf32>
    %207 = arith.mulf %198, %151 : vector<8x32xf32>
    %208 = arith.mulf %192, %200 : vector<8x32xf32>
    %209 = arith.addf %207, %208 : vector<8x32xf32>
    %210 = math.tanh %209 : vector<8x32xf32>
    %211 = arith.mulf %206, %210 : vector<8x32xf32>
    %c0_57 = arith.constant 0 : index
    %c0_58 = arith.constant 0 : index
    %c0_59 = arith.constant 0 : index
    %212 = vector.load %arg2[%c0_57, %c0_58, %c0_59] : memref<4x8x128xf32, #tpu.memory_space<vmem>>, vector<1x8x128xf32>
    %213 = vector.shape_cast %212 : vector<1x8x128xf32> to vector<8x128xf32>
    %cst_60 = arith.constant dense<0.000000e+00> : vector<8x128xf32>
    %214 = tpu.matmul %182, %4, %cst_60 {dimension_numbers = #tpu.dot_dimension_numbers<[1], [0], [0], [1], [0, 0, 1, 1], [], []>} : vector<8x32xf32>, vector<32x128xf32>, vector<8x128xf32> -> vector<8x128xf32>
    %215 = arith.addf %213, %214 : vector<8x128xf32>
    %216 = vector.extract_strided_slice %215 {offsets = [0, 0], sizes = [8, 32], strides = [1, 1]} : vector<8x128xf32> to vector<8x32xf32>
    %217 = arith.negf %216 : vector<8x32xf32>
    %218 = math.exp %217 : vector<8x32xf32>
    %cst_61 = arith.constant 1.000000e+00 : f32
    %219 = vector.broadcast %cst_61 : f32 to vector<8x32xf32>
    %220 = arith.addf %219, %218 : vector<8x32xf32>
    %221 = arith.divf %219, %220 : vector<8x32xf32>
    %222 = vector.extract_strided_slice %215 {offsets = [0, 32], sizes = [8, 32], strides = [1, 1]} : vector<8x128xf32> to vector<8x32xf32>
    %223 = arith.negf %222 : vector<8x32xf32>
    %224 = math.exp %223 : vector<8x32xf32>
    %cst_62 = arith.constant 1.000000e+00 : f32
    %225 = vector.broadcast %cst_62 : f32 to vector<8x32xf32>
    %226 = arith.addf %225, %224 : vector<8x32xf32>
    %227 = arith.divf %225, %226 : vector<8x32xf32>
    %228 = vector.extract_strided_slice %215 {offsets = [0, 64], sizes = [8, 32], strides = [1, 1]} : vector<8x128xf32> to vector<8x32xf32>
    %229 = math.tanh %228 : vector<8x32xf32>
    %230 = vector.extract_strided_slice %215 {offsets = [0, 96], sizes = [8, 32], strides = [1, 1]} : vector<8x128xf32> to vector<8x32xf32>
    %231 = arith.negf %230 : vector<8x32xf32>
    %232 = math.exp %231 : vector<8x32xf32>
    %cst_63 = arith.constant 1.000000e+00 : f32
    %233 = vector.broadcast %cst_63 : f32 to vector<8x32xf32>
    %234 = arith.addf %233, %232 : vector<8x32xf32>
    %235 = arith.divf %233, %234 : vector<8x32xf32>
    %236 = arith.mulf %227, %180 : vector<8x32xf32>
    %237 = arith.mulf %221, %229 : vector<8x32xf32>
    %238 = arith.addf %236, %237 : vector<8x32xf32>
    %239 = math.tanh %238 : vector<8x32xf32>
    %240 = arith.mulf %235, %239 : vector<8x32xf32>
    %c0_64 = arith.constant 0 : index
    %c0_65 = arith.constant 0 : index
    %241 = vector.load %arg6[%c0_64, %c0_65] : memref<8x32xf32, #tpu.memory_space<vmem>>, vector<8x32xf32>
    tpu.vector_store %arg6[%c0_64, %c0_65], %211 {strides = array<i32>} : memref<8x32xf32, #tpu.memory_space<vmem>>, vector<8x32xf32>,
    %c0_66 = arith.constant 0 : index
    %c0_67 = arith.constant 0 : index
    %242 = vector.load %arg7[%c0_66, %c0_67] : memref<8x32xf32, #tpu.memory_space<vmem>>, vector<8x32xf32>
    tpu.vector_store %arg7[%c0_66, %c0_67], %209 {strides = array<i32>} : memref<8x32xf32, #tpu.memory_space<vmem>>, vector<8x32xf32>,
    %c0_68 = arith.constant 0 : index
    %c0_69 = arith.constant 0 : index
    %243 = vector.load %arg8[%c0_68, %c0_69] : memref<8x32xf32, #tpu.memory_space<vmem>>, vector<8x32xf32>
    tpu.vector_store %arg8[%c0_68, %c0_69], %240 {strides = array<i32>} : memref<8x32xf32, #tpu.memory_space<vmem>>, vector<8x32xf32>,
    %c0_70 = arith.constant 0 : index
    %c0_71 = arith.constant 0 : index
    %244 = vector.load %arg9[%c0_70, %c0_71] : memref<8x32xf32, #tpu.memory_space<vmem>>, vector<8x32xf32>
    tpu.vector_store %arg9[%c0_70, %c0_71], %238 {strides = array<i32>} : memref<8x32xf32, #tpu.memory_space<vmem>>, vector<8x32xf32>,
    %c1_i32 = arith.constant 1 : i32
    %245 = arith.cmpi eq, %arg0, %c1_i32 : i32
    %246 = arith.extui %245 : i1 to i32
    %c0_i32_72 = arith.constant 0 : i32
    %247 = arith.cmpi ne, %246, %c0_i32_72 : i32
    scf.if %247 {
      %248 = arith.addf %211, %240 : vector<8x32xf32>
      %c0_73 = arith.constant 0 : index
      %c0_74 = arith.constant 0 : index
      %249 = vector.load %arg5[%c0_73, %c0_74] : memref<8x32xf32, #tpu.memory_space<vmem>>, vector<8x32xf32>
      tpu.vector_store %arg5[%c0_73, %c0_74], %248 {strides = array<i32>} : memref<8x32xf32, #tpu.memory_space<vmem>>, vector<8x32xf32>,
    } else {
    }
    return
  }
  func.func @transform_0(%arg0: i32) -> (i32, i32, i32) {
    %c0_i32 = arith.constant 0 : i32
    %c0_i32_0 = arith.constant 0 : i32
    %c0_i32_1 = arith.constant 0 : i32
    return %arg0, %c0_i32, %c0_i32_0 : i32, i32, i32
  }
  func.func @transform_1(%arg0: i32) -> (i32, i32, i32) {
    %c1_i32 = arith.constant 1 : i32
    %0 = arith.subi %c1_i32, %arg0 : i32
    %c0_i32 = arith.constant 0 : i32
    %c0_i32_0 = arith.constant 0 : i32
    %c0_i32_1 = arith.constant 0 : i32
    return %0, %c0_i32, %c0_i32_0 : i32, i32, i32
  }
  func.func @transform_2(%arg0: i32) -> (i32, i32) {
    %c0_i32 = arith.constant 0 : i32
    %c0_i32_0 = arith.constant 0 : i32
    %c0_i32_1 = arith.constant 0 : i32
    return %c0_i32, %c0_i32_0 : i32, i32
  }
  func.func @transform_3(%arg0: i32) -> (i32, i32) {
    %c0_i32 = arith.constant 0 : i32
    %c0_i32_0 = arith.constant 0 : i32
    %c0_i32_1 = arith.constant 0 : i32
    return %c0_i32, %c0_i32_0 : i32, i32
  }
  func.func @transform_4(%arg0: i32) -> (i32, i32) {
    %c0_i32 = arith.constant 0 : i32
    %c0_i32_0 = arith.constant 0 : i32
    %c0_i32_1 = arith.constant 0 : i32
    return %c0_i32, %c0_i32_0 : i32, i32
  }
}

</mosaic_0001>

<bundles_post_ra>
// kernel: bilstm_forward.1
= control target key start
LH: loop header
LB: loop body
LE: loop exit
PB: predicated region body
PF: predicated region fallthrough
CT: control target
= control target key end

     0   :  { %s1455_s15 = smov 0   ;;  %s1620_s0 = inlined_call_operand.vmem [shape: f32[8,8,128], index: 0, kind: input, shape index: {}]   ;;  %s1621_s1 = inlined_call_operand.vmem [shape: f32[8,8,128], index: 1, kind: input, shape index: {}]   ;;  %s1622_s2 = inlined_call_operand.vmem [shape: f32[32,128], index: 2, kind: input, shape index: {}]   ;;  %s1623_s3 = inlined_call_operand.vmem [shape: f32[32,128], index: 3, kind: input, shape index: {}]   ;;  %s1624_s4 = inlined_call_operand.vmem [shape: f32[8,32], index: 4, kind: output, shape index: {}]  }
   0x1 LB: > { %s1461_s16 = sadd.s32 4294967295, %s1420_s15   ;;  %p1127_p0 = scmp.ge.s32.totalorder %s1420_s15, 1  ;;  %s1420_s15 = sphi %s1455_s15, %s14_s15  }
   0x2   : > { %p173_p1 = scmp.lt.s32.totalorder %s1420_s15, 3 }
   0x4   : > { %p174_p2 = pnand %p1127_p0, %p173_p1 }
   0x5   : > { %s1128_s17 = sshll.u32 (!%p174_p2), %s1461_s16, 2  ;;  %s206_s18 = ssub.s32 (!%p174_p2), 1, %s1461_s16 }
   0x6   : > { %177 = sbr.rel (%p174_p2) target bundleno = 2850 (0xb22), region = 36  ;;  %p201_p3 = scmp.lt.s32.totalorder (!%p174_p2), %s1128_s17, 7 }
   0x7   : > { %s1130_s19 = sshll.u32 (!%p174_p2), %s206_s18, 2  ;;  %p1132_p5 = scmp.ne.s32.totalorder (!%p174_p2), %s1461_s16, 0 }
   0x8   : > { %p208_p4 = scmp.lt.s32.totalorder (!%p174_p2), %s1130_s19, 7 }
   0xd   : > { %s1626_s17 = smov (!%p201_p3, %s1128_s17), 7  ;;  %s1628_s19 = smov (!%p208_p4, %s1130_s19), 7 }
   0xe   : > { %s1129_s20 = sshll.u32 %s1626_s17, 3  ;;  %s1131_s24 = sshll.u32 %s1628_s19, 3  ;;  %vm218_vm0 = vcmask (!%p1132_p5), 261120   ;;  %v1422_v0 = vmov (!%p1132_p5), 0.0  }
   0xf   : > { %s1470_s23 = scalar_lea.vmem %s1620_s0, %s1129_s20  ;;  %s1475_s27 = scalar_lea.vmem %s1621_s1, %s1131_s24  ;;  %219 = vst.msk [vmem:[#allocation2] sm:$0xff] (!%p1132_p5), %vm218_vm0, %v1422_v0  ;;  %220 = vst.msk [vmem:[#allocation3] sm:$0xff] (!%p1132_p5), %vm218_vm0, %v1422_v0 }
  0x10   : > { %217 = sbr.rel (%p1132_p5) target bundleno = 23 (0x17), region = 40  ;;  %221 = vst.msk [vmem:[#allocation4] sm:$0xff] (!%p1132_p5), %vm218_vm0, %v1422_v0  ;;  %222 = vst.msk [vmem:[#allocation5] sm:$0xff] (!%p1132_p5), %vm218_vm0, %v1422_v0 }
  0x17 PF: > { %v223_v1 = vld [vmem:[%s1622_s2] sm:$0xff]  ;;  %v224_v2 = vld [vmem:[%s1622_s2 + $0x8] sm:$0xff]  ;;  %v1423_v4 = vmov 0.0|0.0   ;;  %v225_v7 = vld [vmem:[%s1622_s2 + $0x10] sm:$0xff]  ;;  %vm1424_vm1 = vmmov 0   ;;  %v1425_v10 = vmov 0.0  }
  0x18   : > { %v227_v3 = vld [vmem:[%s1623_s3] sm:$0xff]  ;;  %1286 = vmatprep.subr.bf16.mxu0 %v1423_v4  ;;  %v1488_v5 = vpack.c.bf16 %v224_v2, %v223_v1  ;;  %1292 = vmatprep.subr.bf16.mxu1 %v1423_v4  ;;  %v228_v6 = vld [vmem:[%s1623_s3 + $0x8] sm:$0xff]  ;;  %v226_v8 = vld [vmem:[%s1622_s2 + $0x18] sm:$0xff]  ;;  %s1426_s20 = smov 32   ;;  %vm236_vm2 = vcmask 261120   ;;  %s1427_s21 = smov 64  }
  0x19   : > { %v1500_v9 = vpack.c.bf16 %v228_v6, %v227_v3  ;;  %1206 = vmatprep.mubr.msk.f32.mxu0 %vm1424_vm1, %v1425_v10  ;;  %v229_v11 = vld [vmem:[%s1623_s3 + $0x10] sm:$0xff]  ;;  %v230_v12 = vld [vmem:[%s1623_s3 + $0x18] sm:$0xff]  ;;  %1217 = vmatprep.mubr.msk.f32.mxu1 %vm1424_vm1, %v1425_v10  ;;  %v1513_v13 = vpack.c.bf16 %v226_v8, %v225_v7  ;;  %v232_v14 = vld [vmem:[#allocation3] sm:$0xff]  ;;  %s1428_s22 = smov 96   ;;  %p1155_p6 = scmp.ne.s32.totalorder %s1461_s16, 1 }
  0x1a   : > { %1288 = vmatpush3.bf16.msra.mxu0 %v1488_v5  ;;  %v1517_v15 = vpack.c.bf16 %v230_v12, %v229_v11  ;;  %319 = vrot.lane.b32.xlu1 %v232_v14, %s1426_s20  ;;  %v234_v16 = vld [vmem:[#allocation5] sm:$0xff]  ;;  %v231_v17 = vld [vmem:[#allocation2] sm:$0xff]  ;;  %v233_v18 = vld [vmem:[#allocation4] sm:$0xff] }
  0x1b   : > { %1289 = vmatprep.subr.bf16.mxu0 %v1423_v4  ;;  %1294 = vmatpush3.bf16.msra.mxu1 %v1500_v9  ;;  %v235_v19 = vld [vmem:[%s1470_s23] sm:$0xff]  ;;  %v1135_v20 = vld [vmem:[%s1475_s27 + $0x18] sm:$0xff]  ;;  %v1138_v57 = vld [vmem:[%s1470_s23 + $0x8] sm:$0xff] }
  0x1c   : > { %1295 = vmatprep.subr.bf16.mxu1 %v1423_v4  ;;  %v1141_v61 = vld [vmem:[%s1475_s27 + $0x10] sm:$0xff] }
  0x1e   : > { %1291 = vmatpush3.bf16.msra.mxu0 %v1513_v13  ;;  %423 = vrot.lane.b32.xlu1 %v234_v16, %s1426_s20 }
  0x1f   : > { %1297 = vmatpush3.bf16.msra.mxu1 %v1517_v15  ;;  %1298 = vmatprep.subr.bf16.mxu0 %v1423_v4 }
  0x20   : > { %1304 = vmatprep.subr.bf16.mxu1 %v1423_v4 }
  0x21   : > { %1207 = vmatmul.mubr.msk.f32.vlgmr.msra.gmra.mrb[0].mxu0 %vm236_vm2, %v231_v17 }
  0x22   : > { %1218 = vmatmul.mubr.msk.f32.vlgmr.msra.gmra.mrb[0].mxu1 %vm236_vm2, %v233_v18  ;;  %1300 = vmatpush3.bf16.msra.mxu0 %v1488_v5 }
  0x23   : > { %1301 = vmatprep.subr.bf16.mxu0 %v1423_v4  ;;  %1306 = vmatpush3.bf16.msra.mxu1 %v1500_v9 }
  0x24   : > { %1228 = vmatprep.mubr.msk.f32.mxu0 %vm1424_vm1, %v1425_v10  ;;  %1307 = vmatprep.subr.bf16.mxu1 %v1423_v4 }
  0x25   : > { %1239 = vmatprep.mubr.msk.f32.mxu1 %vm1424_vm1, %v1425_v10 }
  0x26   : > { %1303 = vmatpush3.bf16.msra.mxu0 %v1513_v13 }
  0x27   : > { %1309 = vmatpush3.bf16.msra.mxu1 %v1517_v15  ;;  %1310 = vmatprep.subr.bf16.mxu0 %v1423_v4 }
  0x28   : > { %1316 = vmatprep.subr.bf16.mxu1 %v1423_v4 }
  0x8c   : > { %v320_v41 = vpop.permute.xlu1 %319 }
  0x90   : > { %v424_v43 = vpop.permute.xlu1 %423 }
  0xf4   : > { %v306_v21 = vpop.f32.mrb[0].mxu0 }
  0xf5   : > { %v310_v22 = vadd.f32 %v306_v21, %v235_v19  ;;  %v1208_v23 = vpop.f32.mrb[1].mxu0  ;;  %v410_v24 = vpop.f32.mrb[0].mxu1 }
  0xf6   : > { %v414_v25 = vadd.f32 %v1135_v20, %v410_v24  ;;  %v1219_v26 = vpop.f32.mrb[1].mxu1 }
  0xf7   : > { %1350 = vtanh.f32 %v310_v22  ;;  %v1134_v29 = vmul.f32 -1.442695, %v310_v22 }
  0xf8   : > { %1352 = vtanh.f32 %v414_v25  ;;  %v1137_v30 = vmul.f32 -1.442695, %v414_v25 }
  0xf9   : > { %1354 = vpow2.f32 %v1134_v29 }
  0xfa   : > { %1356 = vpow2.f32 %v1137_v30 }
 0x101   : > { %v1351_v27 = vpop.eup %1350 }
 0x102   : > { %324 = vrot.lane.b32.xlu0 %v1351_v27, %s1427_s21  ;;  %v1353_v28 = vpop.eup %1352 }
 0x103   : > { %v1355_v31 = vpop.eup %1354 }
 0x104   : > { %v314_v32 = vadd.f32 1.0, %v1355_v31  ;;  %v1357_v33 = vpop.eup %1356 }
 0x105   : > { %v418_v34 = vadd.f32 1.0, %v1357_v33 }
 0x106   : > { %428 = vrot.lane.b32.xlu0 %v1353_v28, %s1427_s21  ;;  %1358 = vrcp.f32 %v314_v32 }
 0x107   : > { %1360 = vrcp.f32 %v418_v34 }
 0x110   : > { %v1359_v35 = vpop.eup %1358 }
 0x111   : > { %v1361_v38 = vpop.eup %1360  ;;  %v322_v42 = vmul.f32 %v1359_v35, %v320_v41 }
 0x112   : > { %v426_v46 = vmul.f32 %v1361_v38, %v424_v43 }
 0x174   : > { %v325_v36 = vpop.permute.xlu0 %324 }
 0x175   : > { %v327_v37 = vmul.f32 %v1359_v35, %v325_v36 }
 0x177   : > { %329 = vrot.lane.b32.xlu0 %v327_v37, %s1426_s20 }
 0x178   : > { %v429_v39 = vpop.permute.xlu0 %428 }
 0x179   : > { %v431_v40 = vmul.f32 %v1361_v38, %v429_v39 }
 0x17b   : > { %433 = vrot.lane.b32.xlu1 %v431_v40, %s1426_s20 }
 0x1e9   : > { %v330_v44 = vpop.permute.xlu0 %329 }
 0x1ea   : > { %v332_v45 = vadd.f32 %v330_v44, %v322_v42 }
 0x1ec   : > { %1362 = vtanh.f32 %v332_v45 }
 0x1ed   : > { %v434_v47 = vpop.permute.xlu1 %433 }
 0x1ee   : > { %v436_v48 = vadd.f32 %v434_v47, %v426_v46 }
 0x1f0   : > { %1364 = vtanh.f32 %v436_v48 }
 0x1f6   : > { %v1363_v49 = vpop.eup %1362 }
 0x1f7   : > { %335 = vrot.lane.b32.xlu0 %v1363_v49, %s1427_s21 }
 0x1fa   : > { %v1365_v50 = vpop.eup %1364 }
 0x1fb   : > { %439 = vrot.lane.b32.xlu1 %v1365_v50, %s1427_s21 }
 0x269   : > { %v336_v51 = vpop.permute.xlu0 %335 }
 0x26a   : > { %v338_v52 = vmul.f32 %v1359_v35, %v336_v51 }
 0x26c   : > { %446 = vrot.lane.b32.xlu0 %v338_v52, %s1426_s20 }
 0x26d   : > { %v440_v53 = vpop.permute.xlu1 %439 }
 0x26e   : > { %v442_v54 = vmul.f32 %v1361_v38, %v440_v53  ;;  %v1147_v38 = vld [vmem:[%s1475_s27 + $0x8] sm:$0xff] }
 0x270   : > { %548 = vrot.lane.b32.xlu1 %v442_v54, %s1426_s20 }
 0x2de   : > { %v447_v55 = vpop.permute.xlu0 %446 }
 0x2df   : > { %1229 = vmatmul.mubr.msk.f32.vlgmr.msra.gmra.mrb[2].mxu0 %vm236_vm2, %v447_v55 }
 0x2e0   : > { %1312 = vmatpush3.bf16.msra.mxu0 %v1488_v5  ;;  %1250 = vmatprep.mubr.msk.f32.mxu0 %vm1424_vm1, %v1425_v10 }
 0x2e1   : > { %1313 = vmatprep.subr.bf16.mxu0 %v1423_v4 }
 0x2e2   : > { %v549_v56 = vpop.permute.xlu1 %548 }
 0x2e3   : > { %1240 = vmatmul.mubr.msk.f32.vlgmr.msra.gmra.mrb[2].mxu1 %vm236_vm2, %v549_v56 }
 0x2e4   : > { %1315 = vmatpush3.bf16.msra.mxu0 %v1513_v13  ;;  %1318 = vmatpush3.bf16.msra.mxu1 %v1500_v9 }
 0x2e5   : > { %1319 = vmatprep.subr.bf16.mxu1 %v1423_v4  ;;  %1261 = vmatprep.mubr.msk.f32.mxu1 %vm1424_vm1, %v1425_v10 }
 0x2e6   : > { %1322 = vmatprep.subr.bf16.mxu0 %v1423_v4 }
 0x2e8   : > { %1321 = vmatpush3.bf16.msra.mxu1 %v1517_v15 }
 0x2e9   : > { %1328 = vmatprep.subr.bf16.mxu1 %v1423_v4 }
 0x3b2   : > { %v516_v58 = vpop.f32.mrb[2].mxu0 }
 0x3b3   : > { %v520_v59 = vadd.f32 %v1138_v57, %v516_v58  ;;  %v1230_v60 = vpop.f32.mrb[3].mxu0 }
 0x3b5   : > { %1366 = vtanh.f32 %v520_v59  ;;  %v1140_v3 = vmul.f32 -1.442695, %v520_v59 }
 0x3b6   : > { %v618_v62 = vpop.f32.mrb[2].mxu1 }
 0x3b7   : > { %v622_v63 = vadd.f32 %v1141_v61, %v618_v62  ;;  %v1241_v0 = vpop.f32.mrb[3].mxu1 }
 0x3b9   : > { %1368 = vtanh.f32 %v622_v63  ;;  %v1143_v6 = vmul.f32 -1.442695, %v622_v63 }
 0x3ba   : > { %1370 = vpow2.f32 %v1140_v3 }
 0x3bb   : > { %1372 = vpow2.f32 %v1143_v6 }
 0x3bf   : > { %v1367_v1 = vpop.eup %1366 }
 0x3c0   : > { %530 = vrot.lane.b32.xlu0 %v1367_v1, %s1427_s21  ;;  %v1150_v1 = vld [vmem:[%s1470_s23 + $0x18] sm:$0xff] }
 0x3c3   : > { %v1369_v2 = vpop.eup %1368 }
 0x3c4   : > { %632 = vrot.lane.b32.xlu1 %v1369_v2, %s1427_s21  ;;  %v1371_v7 = vpop.eup %1370 }
 0x3c5   : > { %v524_v8 = vadd.f32 1.0, %v1371_v7  ;;  %v1373_v11 = vpop.eup %1372  ;;  %v953_v7 = vld [vmem:[%s1475_s27] sm:$0xff] }
 0x3c6   : > { %v626_v12 = vadd.f32 1.0, %v1373_v11 }
 0x3c7   : > { %1374 = vrcp.f32 %v524_v8 }
 0x3c8   : > { %1376 = vrcp.f32 %v626_v12 }
 0x3d1   : > { %v1375_v14 = vpop.eup %1374 }
 0x3d2   : > { %v1377_v18 = vpop.eup %1376  ;;  %v528_v21 = vmul.f32 %v1375_v14, %v332_v45 }
 0x3d3   : > { %v630_v24 = vmul.f32 %v1377_v18, %v436_v48 }
 0x432   : > { %v531_v16 = vpop.permute.xlu0 %530 }
 0x433   : > { %v533_v17 = vmul.f32 %v1375_v14, %v531_v16 }
 0x435   : > { %535 = vrot.lane.b32.xlu0 %v533_v17, %s1426_s20 }
 0x436   : > { %v633_v19 = vpop.permute.xlu1 %632 }
 0x437   : > { %v635_v20 = vmul.f32 %v1377_v18, %v633_v19 }
 0x439   : > { %637 = vrot.lane.b32.xlu1 %v635_v20, %s1426_s20 }
 0x4a7   : > { %v536_v22 = vpop.permute.xlu0 %535 }
 0x4a8   : > { %v538_v23 = vadd.f32 %v536_v22, %v528_v21 }
 0x4aa   : > { %1378 = vtanh.f32 %v538_v23 }
 0x4ab   : > { %v638_v25 = vpop.permute.xlu1 %637 }
 0x4ac   : > { %v640_v26 = vadd.f32 %v638_v25, %v630_v24 }
 0x4ae   : > { %1380 = vtanh.f32 %v640_v26 }
 0x4b4   : > { %v1379_v27 = vpop.eup %1378 }
 0x4b5   : > { %541 = vrot.lane.b32.xlu0 %v1379_v27, %s1427_s21 }
 0x4b8   : > { %v1381_v28 = vpop.eup %1380 }
 0x4b9   : > { %643 = vrot.lane.b32.xlu1 %v1381_v28, %s1427_s21 }
 0x527   : > { %v542_v29 = vpop.permute.xlu0 %541 }
 0x528   : > { %v544_v30 = vmul.f32 %v1375_v14, %v542_v29 }
 0x52a   : > { %650 = vrot.lane.b32.xlu0 %v544_v30, %s1426_s20 }
 0x52b   : > { %v644_v31 = vpop.permute.xlu1 %643 }
 0x52c   : > { %v646_v32 = vmul.f32 %v1377_v18, %v644_v31 }
 0x52e   : > { %752 = vrot.lane.b32.xlu1 %v646_v32, %s1426_s20 }
 0x59c   : > { %v651_v33 = vpop.permute.xlu0 %650 }
 0x59d   : > { %1251 = vmatmul.mubr.msk.f32.vlgmr.msra.gmra.mrb[4].mxu0 %vm236_vm2, %v651_v33 }
 0x59e   : > { %1324 = vmatpush3.bf16.msra.mxu0 %v1488_v5  ;;  %1272 = vmatprep.mubr.msk.f32.mxu0 %vm1424_vm1, %v1425_v10  ;;  %v1144_v5 = vld [vmem:[%s1470_s23 + $0x10] sm:$0xff]  ;;  %s1429_s23 = smov (!%p1155_p6), 32  }
 0x59f   : > { %1325 = vmatprep.subr.bf16.mxu0 %v1423_v4 }
 0x5a0   : > { %v753_v34 = vpop.permute.xlu1 %752 }
 0x5a1   : > { %1262 = vmatmul.mubr.msk.f32.vlgmr.msra.gmra.mrb[4].mxu1 %vm236_vm2, %v753_v34 }
 0x5a2   : > { %1327 = vmatpush3.bf16.msra.mxu0 %v1513_v13  ;;  %1330 = vmatpush3.bf16.msra.mxu1 %v1500_v9 }
 0x5a3   : > { %1331 = vmatprep.subr.bf16.mxu1 %v1423_v4  ;;  %1283 = vmatprep.mubr.msk.f32.mxu1 %vm1424_vm1, %v1425_v10 }
 0x5a6   : > { %1333 = vmatpush3.bf16.msra.mxu1 %v1517_v15 }
 0x670   : > { %v720_v35 = vpop.f32.mrb[4].mxu0 }
 0x671   : > { %v724_v36 = vadd.f32 %v1144_v5, %v720_v35  ;;  %v1252_v37 = vpop.f32.mrb[5].mxu0 }
 0x673   : > { %1382 = vtanh.f32 %v724_v36  ;;  %v1146_v4 = vmul.f32 -1.442695, %v724_v36 }
 0x674   : > { %v822_v39 = vpop.f32.mrb[4].mxu1 }
 0x675   : > { %v826_v40 = vadd.f32 %v1147_v38, %v822_v39  ;;  %v1263_v41 = vpop.f32.mrb[5].mxu1 }
 0x677   : > { %1384 = vtanh.f32 %v826_v40  ;;  %v1149_v10 = vmul.f32 -1.442695, %v826_v40 }
 0x678   : > { %1386 = vpow2.f32 %v1146_v4 }
 0x679   : > { %1388 = vpow2.f32 %v1149_v10 }
 0x67d   : > { %v1383_v13 = vpop.eup %1382 }
 0x67e   : > { %734 = vrot.lane.b32.xlu0 %v1383_v13, %s1427_s21 }
 0x681   : > { %v1385_v9 = vpop.eup %1384 }
 0x682   : > { %836 = vrot.lane.b32.xlu1 %v1385_v9, %s1427_s21  ;;  %v1387_v15 = vpop.eup %1386 }
 0x683   : > { %v728_v42 = vadd.f32 1.0, %v1387_v15  ;;  %v1389_v43 = vpop.eup %1388 }
 0x684   : > { %v830_v44 = vadd.f32 1.0, %v1389_v43 }
 0x685   : > { %1390 = vrcp.f32 %v728_v42 }
 0x686   : > { %1392 = vrcp.f32 %v830_v44 }
 0x68f   : > { %v1391_v45 = vpop.eup %1390 }
 0x690   : > { %v1393_v48 = vpop.eup %1392  ;;  %v732_v51 = vmul.f32 %v1391_v45, %v538_v23 }
 0x691   : > { %v834_v54 = vmul.f32 %v1393_v48, %v640_v26 }
 0x6f0   : > { %v735_v46 = vpop.permute.xlu0 %734 }
 0x6f1   : > { %v737_v47 = vmul.f32 %v1391_v45, %v735_v46 }
 0x6f3   : > { %739 = vrot.lane.b32.xlu0 %v737_v47, %s1426_s20 }
 0x6f4   : > { %v837_v49 = vpop.permute.xlu1 %836 }
 0x6f5   : > { %v839_v50 = vmul.f32 %v1393_v48, %v837_v49 }
 0x6f7   : > { %841 = vrot.lane.b32.xlu1 %v839_v50, %s1426_s20 }
 0x765   : > { %v740_v52 = vpop.permute.xlu0 %739 }
 0x766   : > { %v742_v53 = vadd.f32 %v740_v52, %v732_v51 }
 0x768   : > { %1394 = vtanh.f32 %v742_v53 }
 0x769   : > { %v842_v55 = vpop.permute.xlu1 %841 }
 0x76a   : > { %v844_v56 = vadd.f32 %v842_v55, %v834_v54 }
 0x76c   : > { %1396 = vtanh.f32 %v844_v56 }
 0x772   : > { %v1395_v57 = vpop.eup %1394 }
 0x773   : > { %745 = vrot.lane.b32.xlu0 %v1395_v57, %s1427_s21 }
 0x776   : > { %v1397_v58 = vpop.eup %1396 }
 0x777   : > { %847 = vrot.lane.b32.xlu1 %v1397_v58, %s1427_s21 }
 0x7e5   : > { %v746_v59 = vpop.permute.xlu0 %745 }
 0x7e6   : > { %v748_v60 = vmul.f32 %v1391_v45, %v746_v59 }
 0x7e8   : > { %854 = vrot.lane.b32.xlu0 %v748_v60, %s1426_s20 }
 0x7e9   : > { %v848_v61 = vpop.permute.xlu1 %847 }
 0x7ea   : > { %v850_v62 = vmul.f32 %v1393_v48, %v848_v61 }
 0x7ec   : > { %955 = vrot.lane.b32.xlu1 %v850_v62, %s1426_s20 }
 0x85a   : > { %v855_v63 = vpop.permute.xlu0 %854 }
 0x85b   : > { %1273 = vmatmul.mubr.msk.f32.vlgmr.msra.gmra.mrb[6].mxu0 %vm236_vm2, %v855_v63 }
 0x85e   : > { %v956_v0 = vpop.permute.xlu1 %955 }
 0x85f   : > { %1284 = vmatmul.mubr.msk.f32.vlgmr.msra.gmra.mrb[6].mxu1 %vm236_vm2, %v956_v0 }
 0x92e   : > { %v924_v2 = vpop.f32.mrb[6].mxu0 }
 0x92f   : > { %v928_v3 = vadd.f32 %v1150_v1, %v924_v2  ;;  %v1274_v6 = vpop.f32.mrb[7].mxu0 }
 0x931   : > { %1398 = vtanh.f32 %v928_v3  ;;  %v1152_v17 = vmul.f32 -1.442695, %v928_v3 }
 0x932   : > { %v1025_v8 = vpop.f32.mrb[6].mxu1 }
 0x933   : > { %v1029_v11 = vadd.f32 %v1025_v8, %v953_v7  ;;  %v1285_v12 = vpop.f32.mrb[7].mxu1 }
 0x935   : > { %1400 = vtanh.f32 %v1029_v11  ;;  %v1154_v18 = vmul.f32 -1.442695, %v1029_v11 }
 0x936   : > { %1402 = vpow2.f32 %v1152_v17 }
 0x937   : > { %1404 = vpow2.f32 %v1154_v18 }
 0x93b   : > { %v1399_v14 = vpop.eup %1398 }
 0x93c   : > { %938 = vrot.lane.b32.xlu0 %v1399_v14, %s1427_s21 }
 0x93f   : > { %v1401_v16 = vpop.eup %1400 }
 0x940   : > { %1039 = vrot.lane.b32.xlu1 %v1401_v16, %s1427_s21  ;;  %v1403_v19 = vpop.eup %1402 }
 0x941   : > { %v932_v20 = vadd.f32 1.0, %v1403_v19  ;;  %v1405_v21 = vpop.eup %1404 }
 0x942   : > { %v1033_v22 = vadd.f32 1.0, %v1405_v21 }
 0x943   : > { %1406 = vrcp.f32 %v932_v20 }
 0x944   : > { %1408 = vrcp.f32 %v1033_v22 }
 0x94d   : > { %v1407_v23 = vpop.eup %1406 }
 0x94e   : > { %v1409_v26 = vpop.eup %1408  ;;  %v936_v29 = vmul.f32 %v1407_v23, %v742_v53 }
 0x94f   : > { %v1037_v32 = vmul.f32 %v1409_v26, %v844_v56 }
 0x9ae   : > { %v939_v24 = vpop.permute.xlu0 %938 }
 0x9af   : > { %v941_v25 = vmul.f32 %v1407_v23, %v939_v24 }
 0x9b1   : > { %943 = vrot.lane.b32.xlu0 %v941_v25, %s1426_s20 }
 0x9b2   : > { %v1040_v27 = vpop.permute.xlu1 %1039 }
 0x9b3   : > { %v1042_v28 = vmul.f32 %v1409_v26, %v1040_v27 }
 0x9b5   : > { %1044 = vrot.lane.b32.xlu1 %v1042_v28, %s1426_s20 }
 0xa23   : > { %v944_v30 = vpop.permute.xlu0 %943 }
 0xa24   : > { %v946_v31 = vadd.f32 %v944_v30, %v936_v29 }
 0xa26   : > { %1410 = vtanh.f32 %v946_v31 }
 0xa27   : > { %v1045_v33 = vpop.permute.xlu1 %1044 }
 0xa28   : > { %v1047_v34 = vadd.f32 %v1045_v33, %v1037_v32 }
 0xa2a   : > { %1412 = vtanh.f32 %v1047_v34 }
 0xa30   : > { %v1411_v5 = vpop.eup %1410 }
 0xa31   : > { %949 = vrot.lane.b32.xlu0 %v1411_v5, %s1427_s21 }
 0xa34   : > { %v1413_v35 = vpop.eup %1412 }
 0xa35   : > { %1050 = vrot.lane.b32.xlu1 %v1413_v35, %s1427_s21 }
 0xa39   : > { %1060 = vrot.lane.b32.xlu1 %v946_v31, %s1428_s22 }
 0xa3d   : > { %1070 = vrot.lane.b32.xlu1 %v1047_v34, %s1428_s22 }
 0xaa3   : > { %v950_v36 = vpop.permute.xlu0 %949 }
 0xaa4   : > { %v952_v37 = vmul.f32 %v1407_v23, %v950_v36 }
 0xaa6   : > { %1055 = vrot.lane.b32.xlu0 %v952_v37, %s1426_s20 }
 0xaa7   : > { %v1051_v38 = vpop.permute.xlu1 %1050 }
 0xaa8   : > { %v1053_v39 = vmul.f32 %v1409_v26, %v1051_v38 }
 0xaaa   : > { %1065 = vrot.lane.b32.xlu0 %v1053_v39, %s1426_s20  ;;  %v1078_v4 = vadd.f32 (!%p1155_p6), %v1053_v39, %v952_v37 }
 0xaab   : > { %v1061_v40 = vpop.permute.xlu1 %1060 }
 0xaac   : > { %1063 = vst.msk [vmem:[#allocation3] sm:$0xff] %vm236_vm2, %v1061_v40 }
 0xaae   : > { %1080 = vrot.lane.b32.xlu0 (!%p1155_p6), %v1078_v4, %s1429_s23 }
 0xaaf   : > { %v1071_v41 = vpop.permute.xlu1 %1070 }
 0xab0   : > { %1073 = vst.msk [vmem:[#allocation5] sm:$0xff] %vm236_vm2, %v1071_v41 }
 0xb17   : > { %1077 = sbr.rel (%p1155_p6) target bundleno = 2850 (0xb22), region = 44 }
 0xb18   : > { %v1056_v13 = vpop.permute.xlu0 %1055 }
 0xb19   : > { %1058 = vst.msk [vmem:[#allocation2] sm:$0xff] %vm236_vm2, %v1056_v13 }
 0xb1c   : > { %v1066_v9 = vpop.permute.xlu0 %1065 }
 0xb1d   : > { %1068 = vst.msk [vmem:[#allocation4] sm:$0xff] %vm236_vm2, %v1066_v9 }
 0xb20   : > { %v1081_v10 = vpop.permute.xlu0 %1080 }
 0xb21   : > { %1083 = vst.msk [vmem:[%s1624_s4] sm:$0xff] %vm236_vm2, %v1081_v10 }
 0xb22 PF: > { %s14_s15 = sadd.s32 1, %s1420_s15  }
 0xb23   : > { %p11_p7 = scmp.ge.s32.totalorder %s14_s15, 4  }
 0xb25   :  { %13 = sbr.rel (!%p11_p7) target bundleno = 1 (0x1), region = 79 }

</bundles_post_ra>
